<compile_context>
chip_gen: v5e
topology: v5e:2x2
jax: 0.10.0
libtpu: 0.0.40
codegen_flags: <defaults>
</compile_context>

<pallas_src>
import jax
import jax.numpy as jnp
from jax.experimental import pallas as pl
from jax.experimental.pallas import tpu as pltpu


# ---------------------------------------------------------------------------
# Pallas kernel: contrastive biencoder loss
# ---------------------------------------------------------------------------
def _biencoder_loss_kernel(alpha_ref, q_ref, d_ref, w_row_ref, w_col_ref, o_ref):
    alpha = alpha_ref[0]                       # scalar (SMEM)
    q = q_ref[...]                             # (B, H) bf16 query CLS embeddings
    d = d_ref[...]                             # (B, H) bf16 doc   CLS embeddings
    w_row = w_row_ref[...]                     # (1, B) f32 per-class NLL weights
    w_col = w_col_ref[...]                     # (B, 1) f32 same weights, column layout

    # scores = embed_q @ embed_d.T  — bf16 operands, f32 accumulation on the MXU.
    scores = jax.lax.dot_general(
        q, d, (((1,), (1,)), ((), ())), preferred_element_type=jnp.float32
    )                                          # (B, B) f32

    # Diagonal of the score matrix computed directly (no B^2 iota/mask):
    # diag[i] = q[i] . d[i]
    q32 = q.astype(jnp.float32)
    d32 = d.astype(jnp.float32)
    diag = jnp.sum(q32 * d32, axis=1, keepdims=True)                     # (B, 1)

    # log-sum-exp along dim=1 (over documents, per query row)
    row_max = jnp.max(scores, axis=1, keepdims=True)
    row_lse = jnp.log(jnp.sum(jnp.exp(scores - row_max), axis=1, keepdims=True)) + row_max
    # log-sum-exp along dim=0 (over queries, per document column)
    col_max = jnp.max(scores, axis=0, keepdims=True)
    col_lse = jnp.log(jnp.sum(jnp.exp(scores - col_max), axis=0, keepdims=True)) + col_max

    # F.nll_loss(log_softmax, diag_targets, weight=w, reduction='mean')
    #   = -sum_i w[i] * (diag[i] - lse[i]) / sum_i w[i]
    w_sum = jnp.sum(w_row)
    wd = jnp.sum(w_col * diag)                                           # sum_i w[i]*diag[i]
    q2d_loss = -(wd - jnp.sum(w_col * row_lse)) / w_sum
    d2q_loss = -(wd - jnp.sum(w_row * col_lse)) / w_sum

    loss = alpha * q2d_loss + (1.0 - alpha) * d2q_loss
    o_ref[...] = jnp.full((1, 1), loss, dtype=jnp.float32)


def biencoder_loss_pallas(embed_q, embed_d, weights, alpha):
    B, H = embed_q.shape
    # Feed bf16 to the kernel (MXU-native, half the DMA bytes); accumulation is f32.
    q = embed_q.astype(jnp.bfloat16)
    d = embed_d.astype(jnp.bfloat16)
    w_row = weights.reshape(1, B).astype(jnp.float32)
    w_col = weights.reshape(B, 1).astype(jnp.float32)
    alpha_arr = jnp.asarray([alpha], dtype=jnp.float32)

    vmem = pltpu.MemorySpace.VMEM
    out = pl.pallas_call(
        _biencoder_loss_kernel,
        out_shape=jax.ShapeDtypeStruct((1, 1), jnp.float32),
        # gridless: single invocation, whole arrays resident in VMEM/SMEM.
        in_specs=[
            pl.BlockSpec(memory_space=pltpu.MemorySpace.SMEM),  # alpha scalar
            pl.BlockSpec(memory_space=vmem),                    # embed_q
            pl.BlockSpec(memory_space=vmem),                    # embed_d
            pl.BlockSpec(memory_space=vmem),                    # weights (1,B)
            pl.BlockSpec(memory_space=vmem),                    # weights (B,1)
        ],
        out_specs=pl.BlockSpec(memory_space=vmem),
        # TODO(synk): for realistic batch sizes (B ~ 1k-8k) tile the query rows
        # with a grid, accumulate the row-LSE online, derive the column LSE from
        # a transposed second MXU pass, and raise vmem_limit_bytes via
        # pltpu.CompilerParams — a fully resident f32 (B,B) scores block breaks
        # v7x's 64 MiB VMEM (and the 16/32 MiB default scoped limits) first.
    )(alpha_arr, q, d, w_row, w_col)
    return out[0, 0]


# ---------------------------------------------------------------------------
# Small deterministic BERT-like encoder (plain JAX glue).
# TODO(synk): the pretrained HuggingFace BERT encoders (AutoModel.from_pretrained)
# have no in-script equivalent; replaced with a 1-layer synthetic transformer.
# ---------------------------------------------------------------------------
def init_encoder_params(key, vocab, max_seq, hidden, ffn, n_types=2):
    ks = jax.random.split(key, 16)
    s = 0.02
    p = {
        "word_emb": jax.random.normal(ks[0], (vocab, hidden), jnp.float32) * s,
        "type_emb": jax.random.normal(ks[1], (n_types, hidden), jnp.float32) * s,
        "pos_emb": jax.random.normal(ks[2], (max_seq, hidden), jnp.float32) * s,
        "wq": jax.random.normal(ks[3], (hidden, hidden), jnp.float32) * s,
        "bq": jnp.zeros((hidden,), jnp.float32),
        "wk": jax.random.normal(ks[4], (hidden, hidden), jnp.float32) * s,
        "bk": jnp.zeros((hidden,), jnp.float32),
        "wv": jax.random.normal(ks[5], (hidden, hidden), jnp.float32) * s,
        "bv": jnp.zeros((hidden,), jnp.float32),
        "wo": jax.random.normal(ks[6], (hidden, hidden), jnp.float32) * s,
        "bo": jnp.zeros((hidden,), jnp.float32),
        "w1": jax.random.normal(ks[7], (hidden, ffn), jnp.float32) * s,
        "b1": jnp.zeros((ffn,), jnp.float32),
        "w2": jax.random.normal(ks[8], (ffn, hidden), jnp.float32) * s,
        "b2": jnp.zeros((hidden,), jnp.float32),
        "ln0_g": jnp.ones((hidden,), jnp.float32),
        "ln0_b": jnp.zeros((hidden,), jnp.float32),
        "ln1_g": jnp.ones((hidden,), jnp.float32),
        "ln1_b": jnp.zeros((hidden,), jnp.float32),
        "ln2_g": jnp.ones((hidden,), jnp.float32),
        "ln2_b": jnp.zeros((hidden,), jnp.float32),
    }
    return p


def _layer_norm(x, g, b, eps=1e-12):
    mu = jnp.mean(x, axis=-1, keepdims=True)
    var = jnp.mean((x - mu) ** 2, axis=-1, keepdims=True)
    return (x - mu) * jax.lax.rsqrt(var + eps) * g + b


def bert_like_encode(p, input_ids, token_type_ids, attention_mask, n_heads):
    B, S = input_ids.shape
    H = p["word_emb"].shape[1]
    dh = H // n_heads

    x = p["word_emb"][input_ids] + p["type_emb"][token_type_ids] + p["pos_emb"][None, :S, :]
    x = _layer_norm(x, p["ln0_g"], p["ln0_b"])

    q = (x @ p["wq"] + p["bq"]).reshape(B, S, n_heads, dh)
    k = (x @ p["wk"] + p["bk"]).reshape(B, S, n_heads, dh)
    v = (x @ p["wv"] + p["bv"]).reshape(B, S, n_heads, dh)

    att = jnp.einsum("bqhd,bkhd->bhqk", q, k) / jnp.sqrt(jnp.float32(dh))
    mask_bias = (1.0 - attention_mask[:, None, None, :].astype(jnp.float32)) * -1e9
    att = jax.nn.softmax(att + mask_bias, axis=-1)
    ctx = jnp.einsum("bhqk,bkhd->bqhd", att, v).reshape(B, S, H)

    a = _layer_norm(x + ctx @ p["wo"] + p["bo"], p["ln1_g"], p["ln1_b"])
    f = jax.nn.gelu(a @ p["w1"] + p["b1"]) @ p["w2"] + p["b2"]
    h = _layer_norm(a + f, p["ln2_g"], p["ln2_b"])
    return h[:, 0, :]  # last_hidden_state[:, 0, :]  (CLS)


# ---------------------------------------------------------------------------
# Full Biencoder forward
# ---------------------------------------------------------------------------
def biencoder_forward(params_q, params_d, alpha, n_heads,
                      q_input_ids, q_token_type_ids, q_attention_mask,
                      d_input_ids, d_token_type_ids, d_attention_mask,
                      weights):
    embed_q = bert_like_encode(params_q, q_input_ids, q_token_type_ids,
                               q_attention_mask, n_heads)
    embed_d = bert_like_encode(params_d, d_input_ids, d_token_type_ids,
                               d_attention_mask, n_heads)
    return biencoder_loss_pallas(embed_q, embed_d, weights, alpha)


def _loss_reference(embed_q, embed_d, weights, alpha):
    scores = embed_q @ embed_d.T
    q2d = jax.nn.log_softmax(scores, axis=1)
    d2q = jax.nn.log_softmax(scores, axis=0)
    B = scores.shape[0]
    idx = jnp.arange(B)
    w_sum = jnp.sum(weights)
    q2d_loss = -jnp.sum(weights * q2d[idx, idx]) / w_sum
    d2q_loss = -jnp.sum(weights * d2q[idx, idx]) / w_sum
    return alpha * q2d_loss + (1.0 - alpha) * d2q_loss


if __name__ == "__main__":
    key = jax.random.PRNGKey(0)
    k_pq, k_pd, k_qid, k_did, k_w = jax.random.split(key, 5)

    B, S, H, VOCAB, HEADS, FFN = 8, 8, 128, 64, 4, 256
    ALPHA = 0.5

    params_q = init_encoder_params(k_pq, VOCAB, S, H, FFN)
    params_d = init_encoder_params(k_pd, VOCAB, S, H, FFN)

    q_input_ids = jax.random.randint(k_qid, (B, S), 0, VOCAB, dtype=jnp.int32)
    d_input_ids = jax.random.randint(k_did, (B, S), 0, VOCAB, dtype=jnp.int32)
    q_token_type_ids = jnp.zeros((B, S), jnp.int32)
    d_token_type_ids = jnp.zeros((B, S), jnp.int32)
    q_attention_mask = jnp.ones((B, S), jnp.int32)
    d_attention_mask = jnp.ones((B, S), jnp.int32)
    weights = jax.random.uniform(k_w, (B,), jnp.float32, 0.5, 1.5)

    loss = biencoder_forward(params_q, params_d, ALPHA, HEADS,
                             q_input_ids, q_token_type_ids, q_attention_mask,
                             d_input_ids, d_token_type_ids, d_attention_mask,
                             weights)
    loss = jax.block_until_ready(loss)

    # sanity check against a pure-JAX reference of the loss math, using the
    # same bf16-cast embeddings the kernel consumes (f32 accumulation).
    embed_q = bert_like_encode(params_q, q_input_ids, q_token_type_ids,
                               q_attention_mask, HEADS)
    embed_d = bert_like_encode(params_d, d_input_ids, d_token_type_ids,
                               d_attention_mask, HEADS)
    ref = _loss_reference(embed_q.astype(jnp.bfloat16).astype(jnp.float32),
                          embed_d.astype(jnp.bfloat16).astype(jnp.float32),
                          weights, ALPHA)
    assert jnp.allclose(loss, ref, atol=1e-4, rtol=1e-4), (loss, ref)

    print("KERNEL_OK")
</pallas_src>

<mosaic_0001>
module attributes {stable_mosaic.version = 11 : i64} {
  func.func @_biencoder_loss_kernel(%arg0: memref<1xf32, #tpu.memory_space<smem>>, %arg1: memref<8x128xbf16, #tpu.memory_space<vmem>>, %arg2: memref<8x128xbf16, #tpu.memory_space<vmem>>, %arg3: memref<1x8xf32, #tpu.memory_space<vmem>>, %arg4: memref<8x1xf32, #tpu.memory_space<vmem>>, %arg5: memref<1x1xf32, #tpu.memory_space<vmem>>) attributes {dimension_semantics = [], scalar_prefetch = 0 : i64, scratch_operands = 0 : i64, tpu.core_type = #tpu.core_type<tc>} {
    %c0 = arith.constant 0 : index
    %0 = memref.load %arg0[%c0] : memref<1xf32, #tpu.memory_space<smem>>
    %c0_0 = arith.constant 0 : index
    %c0_1 = arith.constant 0 : index
    %1 = vector.load %arg1[%c0_0, %c0_1] : memref<8x128xbf16, #tpu.memory_space<vmem>>, vector<8x128xbf16>
    %c0_2 = arith.constant 0 : index
    %c0_3 = arith.constant 0 : index
    %2 = vector.load %arg2[%c0_2, %c0_3] : memref<8x128xbf16, #tpu.memory_space<vmem>>, vector<8x128xbf16>
    %c0_4 = arith.constant 0 : index
    %c0_5 = arith.constant 0 : index
    %3 = vector.load %arg3[%c0_4, %c0_5] : memref<1x8xf32, #tpu.memory_space<vmem>>, vector<1x8xf32>
    %c0_6 = arith.constant 0 : index
    %c0_7 = arith.constant 0 : index
    %4 = vector.load %arg4[%c0_6, %c0_7] : memref<8x1xf32, #tpu.memory_space<vmem>>, vector<8x1xf32>
    %cst = arith.constant dense<0.000000e+00> : vector<8x8xf32>
    %5 = tpu.matmul %1, %2, %cst {dimension_numbers = #tpu.dot_dimension_numbers<[1], [1], [0], [0], [0, 0, 1, 0], [], []>} : vector<8x128xbf16>, vector<8x128xbf16>, vector<8x8xf32> -> vector<8x8xf32>
    %6 = arith.extf %1 : vector<8x128xbf16> to vector<8x128xf32>
    %7 = arith.extf %2 : vector<8x128xbf16> to vector<8x128xf32>
    %8 = arith.mulf %6, %7 : vector<8x128xf32>
    %cst_8 = arith.constant dense<0.000000e+00> : vector<8xf32>
    %9 = vector.multi_reduction <add>, %8, %cst_8 [1] : vector<8x128xf32> to vector<8xf32>
    %10 = vector.shape_cast %9 : vector<8xf32> to vector<8x1xf32>
    %cst_9 = arith.constant dense<0xFF800000> : vector<8xf32>
    %11 = vector.multi_reduction <maximumf>, %5, %cst_9 [1] : vector<8x8xf32> to vector<8xf32>
    %12 = vector.shape_cast %11 : vector<8xf32> to vector<8x1xf32>
    %13 = vector.broadcast %12 : vector<8x1xf32> to vector<8x8xf32>
    %14 = arith.subf %5, %13 : vector<8x8xf32>
    %15 = math.exp %14 : vector<8x8xf32>
    %cst_10 = arith.constant dense<0.000000e+00> : vector<8xf32>
    %16 = vector.multi_reduction <add>, %15, %cst_10 [1] : vector<8x8xf32> to vector<8xf32>
    %17 = vector.shape_cast %16 : vector<8xf32> to vector<8x1xf32>
    %18 = math.log %17 : vector<8x1xf32>
    %19 = arith.addf %18, %12 : vector<8x1xf32>
    %cst_11 = arith.constant dense<0xFF800000> : vector<8xf32>
    %20 = vector.multi_reduction <maximumf>, %5, %cst_11 [0] : vector<8x8xf32> to vector<8xf32>
    %21 = vector.shape_cast %20 : vector<8xf32> to vector<1x8xf32>
    %22 = vector.broadcast %21 : vector<1x8xf32> to vector<8x8xf32>
    %23 = arith.subf %5, %22 : vector<8x8xf32>
    %24 = math.exp %23 : vector<8x8xf32>
    %cst_12 = arith.constant dense<0.000000e+00> : vector<8xf32>
    %25 = vector.multi_reduction <add>, %24, %cst_12 [0] : vector<8x8xf32> to vector<8xf32>
    %26 = vector.shape_cast %25 : vector<8xf32> to vector<1x8xf32>
    %27 = math.log %26 : vector<1x8xf32>
    %28 = arith.addf %27, %21 : vector<1x8xf32>
    %29 = vector.shape_cast %3 : vector<1x8xf32> to vector<1x1x8xf32>
    %cst_13 = arith.constant dense<0.000000e+00> : vector<1xf32>
    %30 = vector.multi_reduction <add>, %29, %cst_13 [1, 2] : vector<1x1x8xf32> to vector<1xf32>
    %31 = vector.shape_cast %30 : vector<1xf32> to vector<1x1x1xf32>
    %32 = vector.extract %31[0, 0, 0] : f32 from vector<1x1x1xf32>
    %33 = arith.mulf %4, %10 : vector<8x1xf32>
    %34 = vector.shape_cast %33 : vector<8x1xf32> to vector<1x8x1xf32>
    %cst_14 = arith.constant dense<0.000000e+00> : vector<1xf32>
    %35 = vector.multi_reduction <add>, %34, %cst_14 [1, 2] : vector<1x8x1xf32> to vector<1xf32>
    %36 = vector.shape_cast %35 : vector<1xf32> to vector<1x1x1xf32>
    %37 = vector.extract %36[0, 0, 0] : f32 from vector<1x1x1xf32>
    %38 = arith.mulf %4, %19 : vector<8x1xf32>
    %39 = vector.shape_cast %38 : vector<8x1xf32> to vector<1x8x1xf32>
    %cst_15 = arith.constant dense<0.000000e+00> : vector<1xf32>
    %40 = vector.multi_reduction <add>, %39, %cst_15 [1, 2] : vector<1x8x1xf32> to vector<1xf32>
    %41 = vector.shape_cast %40 : vector<1xf32> to vector<1x1x1xf32>
    %42 = vector.extract %41[0, 0, 0] : f32 from vector<1x1x1xf32>
    %43 = arith.subf %37, %42 : f32
    %cst_16 = arith.constant 0.000000e+00 : f32
    %44 = arith.subf %cst_16, %43 : f32
    %45 = arith.divf %44, %32 : f32
    %46 = arith.mulf %3, %28 : vector<1x8xf32>
    %47 = vector.shape_cast %46 : vector<1x8xf32> to vector<1x1x8xf32>
    %cst_17 = arith.constant dense<0.000000e+00> : vector<1xf32>
    %48 = vector.multi_reduction <add>, %47, %cst_17 [1, 2] : vector<1x1x8xf32> to vector<1xf32>
    %49 = vector.shape_cast %48 : vector<1xf32> to vector<1x1x1xf32>
    %50 = vector.extract %49[0, 0, 0] : f32 from vector<1x1x1xf32>
    %51 = arith.subf %37, %50 : f32
    %cst_18 = arith.constant 0.000000e+00 : f32
    %52 = arith.subf %cst_18, %51 : f32
    %53 = arith.divf %52, %32 : f32
    %54 = arith.mulf %0, %45 : f32
    %cst_19 = arith.constant 1.000000e+00 : f32
    %55 = arith.subf %cst_19, %0 : f32
    %56 = arith.mulf %55, %53 : f32
    %57 = arith.addf %54, %56 : f32
    %58 = vector.broadcast %57 : f32 to vector<1x1xf32>
    %c0_20 = arith.constant 0 : index
    %c0_21 = arith.constant 0 : index
    %59 = vector.load %arg5[%c0_20, %c0_21] : memref<1x1xf32, #tpu.memory_space<vmem>>, vector<1x1xf32>
    tpu.vector_store %arg5[%c0_20, %c0_21], %58 {strides = array<i32>} : memref<1x1xf32, #tpu.memory_space<vmem>>, vector<1x1xf32>,
    return
  }
}

</mosaic_0001>

<bundles_post_ra>
// kernel: tpu_custom_call.1
= control target key start
LH: loop header
LB: loop body
LE: loop exit
PB: predicated region body
PF: predicated region fallthrough
CT: control target
= control target key end

     0   :  { %s288_s0 = inlined_call_operand.<no memory space> [shape: f32[1], index: 0, kind: input, shape index: {}]   ;;  %s289_s1 = inlined_call_operand.vmem [shape: bf16[8,128], index: 1, kind: input, shape index: {}]   ;;  %s290_s2 = inlined_call_operand.vmem [shape: bf16[8,128], index: 2, kind: input, shape index: {}]   ;;  %s291_s3 = inlined_call_operand.vmem [shape: f32[1,8], index: 3, kind: input, shape index: {}]   ;;  %s292_s4 = inlined_call_operand.vmem [shape: f32[8,1], index: 4, kind: input, shape index: {}]   ;;  %s293_s5 = inlined_call_operand.hbm [shape: f32[1,1], index: 5, kind: output, shape index: {}]  }
   0x1   :  { %v25_v0 = vld [vmem:[%s290_s2] sm:$0xf] }
   0x2   :  { %11 = vsyncpa [#allocation4], 0  ;;  %35 = vmatpush.bf16.xpose.msra.mxu0 %v25_v0  ;;  %v24_v1 = vld [vmem:[%s289_s1] sm:$0xf]  ;;  %vm46_vm0 = vcmask 64512   ;;  %vm78_vm1 = vcmask 57344   ;;  %v42_v28 = vunpack.c.l.bf16 %v25_v0 }
   0x3   :  { %v26_v6 = vld [vmem:[%s291_s3] sm:$0x1]  ;;  %v41_v29 = vunpack.c.l.bf16 %v24_v1  ;;  %vm90_vm2 = vcmask 7168   ;;  %s162_s8 = ssub.f32 1.0, %s288_s0  ;;  %s231_s14 = smov [#allocation3]   ;;  %vm166_vm7 = vcmask 0  }
   0x4   :  { %v79_v8 = vsel %vm78_vm1, %v26_v6, 0.0  ;;  %v27_v44 = vld [vmem:[%s292_s4] sm:$0xff]  ;;  %s173_s15 = sshll.u32 %s231_s14, 4  ;;  %s175_s19 = sshll.u32 %s293_s5, 4  ;;  %s174_s15 = int_to_ptr.vmem [resolvable:$true] %s173_s15  ;;  %s176_s19 = int_to_ptr.hbm [resolvable:$true] %s175_s19 }
   0x5   :  { %v43_v30 = vmul.f32 %v42_v28, %v41_v29 }
   0x9   :  { %36 = vmatmul.bf16.vlgmr.msra.gmra.mxu0 %v24_v1 }
  0x86   :  { %v37_v2 = vpop.f32.mrf.mxu0 }
  0x87   :  { %v47_v3 = vsel %vm46_vm0, %v37_v2, -inf }
  0x88   :  { %48 = vmax.xlane.f32.xlu0 %v47_v3  ;;  %v59_v4 = vrot.slane %v47_v3, 4 }
  0x8a   :  { %v60_v5 = vmax.f32 %v47_v3, %v59_v4 }
  0x8c   :  { %v61_v7 = vrot.slane %v60_v5, 2 }
  0x8e   :  { %v62_v9 = vmax.f32 %v60_v5, %v61_v7  ;;  %v39_v10 = vpop.f32.mrf.mxu0 }
  0x90   :  { %v63_v11 = vrot.slane %v62_v9, 1  ;;  %80 = vadd.xlane.f32.xlu0 %v79_v8 }
  0x92   :  { %v64_v12 = vmax.f32 %v62_v9, %v63_v11 }
  0x94   :  { %v65_v13 = vsub.f32 %v37_v2, %v64_v12 }
  0x96   :  { %v66_v14 = vmul.f32 1.442695, %v65_v13 }
  0x98   :  { %195 = vpow2.f32 %v66_v14 }
  0x9e   :  { %v196_v15 = vpop.eup %195 }
  0x9f   :  { %v68_v16 = vsel %vm46_vm0, %v196_v15, 0.0 }
  0xa0   :  { %v69_v17 = vrot.slane %v68_v16, 4 }
  0xa2   :  { %v70_v18 = vadd.f32 %v69_v17, %v68_v16 }
  0xa4   :  { %v71_v19 = vrot.slane %v70_v18, 2 }
  0xa6   :  { %v72_v20 = vadd.f32 %v71_v19, %v70_v18 }
  0xa8   :  { %v73_v21 = vrot.slane %v72_v20, 1 }
  0xaa   :  { %v74_v22 = vadd.f32 %v73_v21, %v72_v20 }
  0xac   :  { %197 = vlog2.f32 %v74_v22 }
  0xb2   :  { %v198_v23 = vpop.eup %197 }
  0xb3   :  { %v76_v24 = vmul.f32 0.6931472, %v198_v23 }
  0xb5   :  { %v77_v25 = vadd.f32 %v76_v24, %v64_v12 }
  0xb7   :  { %v131_v26 = vmul.f32 %v77_v25, %v26_v6 }
  0xb9   :  { %v132_v27 = vsel %vm78_vm1, %v131_v26, 0.0 }
  0xba   :  { %133 = vadd.xlane.f32.xlu0 %v132_v27 }
  0xfb   :  { %v49_v31 = vpop.xlane.xlu0 %48 }
  0xfc   :  { %v50_v32 = vsub.f32 %v37_v2, %v49_v31 }
  0xfe   :  { %v51_v33 = vmul.f32 1.442695, %v50_v32 }
 0x100   :  { %199 = vpow2.f32 %v51_v33 }
 0x103   :  { %v81_v36 = vpop.xlane.xlu0 %80 }
 0x104   :  { %v82_v37 = vrot.slane %v81_v36, 4 }
 0x106   :  { %v200_v34 = vpop.eup %199  ;;  %v83_v38 = vadd.f32 %v82_v37, %v81_v36 }
 0x107   :  { %v53_v35 = vsel %vm46_vm0, %v200_v34, 0.0 }
 0x108   :  { %54 = vadd.xlane.f32.xlu1 %v53_v35  ;;  %v84_v39 = vrot.slane %v83_v38, 2 }
 0x10a   :  { %v85_v40 = vadd.f32 %v84_v39, %v83_v38 }
 0x10c   :  { %v86_v41 = vrot.slane %v85_v40, 1 }
 0x10e   :  { %v87_v42 = vadd.f32 %v86_v41, %v85_v40 }
 0x110   :  { %44 = vadd.xlane.f32.xlu1 %v43_v30  ;;  %184 = vpush %v87_v42 }
 0x12d   :  { %v134_v54 = vpop.xlane.xlu0 %133 }
 0x12e   :  { %v135_v57 = vrot.slane %v134_v54, 4 }
 0x130   :  { %v136_v61 = vadd.f32 %v135_v57, %v134_v54 }
 0x132   :  { %v137_v2 = vrot.slane %v136_v61, 2 }
 0x134   :  { %v138_v8 = vadd.f32 %v137_v2, %v136_v61 }
 0x136   :  { %v139_v16 = vrot.slane %v138_v8, 1 }
 0x138   :  { %v140_v20 = vadd.f32 %v139_v16, %v138_v8 }
 0x141   :  { %s185_s3 = spop %184 }
 0x142   :  { %v114_v53 = vstv %s185_s3 }
 0x143   :  { %vm120_vm3 = vweird.f32 %v114_v53  ;;  %v126_v10 = vand.u32 2147483648, %v114_v53  ;;  %v124_v12 = vand.u32 2147483647, %v114_v53 }
 0x145   :  { %v127_v15 = vor.u32 1.1754944e-38, %v126_v10  ;;  %vm125_vm6 = vcmp.eq.f32.partialorder %v124_v12, 8.507059e+37 }
 0x17b   :  { %v55_v43 = vpop.xlane.xlu1 %54 }
 0x17c   :  { %201 = vlog2.f32 %v55_v43 }
 0x17d   :  { %203 = vrcp.f32 %v114_v53 }
 0x182   :  { %v202_v45 = vpop.eup %201 }
 0x183   :  { %v57_v46 = vmul.f32 0.6931472, %v202_v45  ;;  %v45_v47 = vpop.xlane.xlu1 %44  ;;  %v204_v55 = vpop.eup %203 }
 0x184   :  { %v89_v48 = vmul.f32 %v45_v47, %v27_v44  ;;  %v116_v59 = vmul.f32 %v204_v55, %v114_v53  ;;  %vm121_vm4 = vweird.f32 %v204_v55 }
 0x185   :  { %v58_v49 = vadd.f32 %v57_v46, %v49_v31  ;;  %vm122_vm5 = vmor %vm120_vm3, %vm121_vm4 }
 0x186   :  { %v91_v50 = vsel %vm90_vm2, %v89_v48, 0.0  ;;  %v117_v63 = vsub.f32 1.0, %v116_v59 }
 0x187   :  { %92 = vadd.xlane.f32.xlu2 %v91_v50  ;;  %v101_v51 = vmul.f32 %v58_v49, %v27_v44 }
 0x188   :  { %v118_v5 = vmul.f32 %v204_v55, %v117_v63 }
 0x189   :  { %v102_v52 = vsel %vm90_vm2, %v101_v51, 0.0 }
 0x18a   :  { %v119_v11 = vadd.f32 %v204_v55, %v118_v5 }
 0x18c   :  { %v123_v17 = vsel %vm122_vm5, %v204_v55, %v119_v11 }
 0x18d   :  { %v128_v19 = vsel %vm125_vm6, %v127_v15, %v123_v17 }
 0x18f   :  { %103 = vadd.xlane.f32.xlu2 %v102_v52 }
 0x1fa   :  { %v93_v56 = vpop.xlane.xlu2 %92 }
 0x1fb   :  { %v94_v58 = vrot.slane %v93_v56, 4 }
 0x1fd   :  { %v95_v60 = vadd.f32 %v94_v58, %v93_v56 }
 0x1ff   :  { %v96_v62 = vrot.slane %v95_v60, 2 }
 0x201   :  { %v97_v0 = vadd.f32 %v96_v62, %v95_v60 }
 0x202   :  { %v104_v1 = vpop.xlane.xlu2 %103 }
 0x203   :  { %v105_v3 = vrot.slane %v104_v1, 4  ;;  %v98_v4 = vrot.slane %v97_v0, 1 }
 0x205   :  { %v106_v6 = vadd.f32 %v105_v3, %v104_v1  ;;  %v99_v7 = vadd.f32 %v98_v4, %v97_v0 }
 0x207   :  { %v107_v9 = vrot.slane %v106_v6, 2  ;;  %186 = vpush %v99_v7 }
 0x209   :  { %v108_v13 = vadd.f32 %v107_v9, %v106_v6 }
 0x20b   :  { %v109_v14 = vrot.slane %v108_v13, 1 }
 0x20d   :  { %v110_v18 = vadd.f32 %v109_v14, %v108_v13 }
 0x20f   :  { %188 = vpush %v110_v18 }
 0x210   :  { %190 = vpush %v128_v19 }
 0x211   :  { %192 = vpush %v140_v20 }
 0x238   :  { %s187_s4 = spop %186 }
 0x240   :  { %s189_s24 = spop %188 }
 0x241   :  { %s112_s25 = ssub.f32 %s187_s4, %s189_s24  ;;  %s191_s26 = spop %190 }
 0x242   :  { %s193_s27 = spop %192 }
 0x243   :  { %s113_s28 = ssub.f32 0.0, %s112_s25 }
 0x244   :  { %s142_s29 = ssub.f32 %s187_s4, %s193_s27 }
 0x245   :  { %s130_s30 = smul.f32 %s191_s26, %s113_s28 }
 0x246   :  { %s143_s9 = ssub.f32 0.0, %s142_s29 }
 0x247   :  { %s161_s12 = smul.f32 %s130_s30, %s288_s0 }
 0x248   :  { %s160_s13 = smul.f32 %s191_s26, %s143_s9 }
 0x24a   :  { %s163_s16 = smul.f32 %s162_s8, %s160_s13 }
 0x24c   :  { %s164_s20 = sadd.f32 %s163_s16, %s161_s12 }
 0x24e   :  { %v165_v21 = vstv %s164_s20 }
 0x24f   :  { %167 = vst.msk [vmem:[#allocation3] sm:$0x1] %vm166_vm7, %v165_v21 }
 0x250   :  { %178 = dma.vmem_to_hbm [thread:$0]  %s174_s15, 16, %s176_s19, [#allocation4]  }
 0x251   :  { %229 = dma.done.wait [#allocation4], 16  }
 0x252   :  { %230 = vsyncadd [#allocation4], 4294967280 }
 0x253   :  { %183 = vsyncpa [#allocation4], 1 }

</bundles_post_ra>
